<compile_context>
chip_gen: v5e
topology: v5e:2x2
jax: 0.10.0
libtpu: 0.0.40
codegen_flags: <defaults>
</compile_context>

<pallas_src>
import functools
import math

import jax
import jax.numpy as jnp
from jax.experimental import pallas as pl
from jax.experimental.pallas import tpu as pltpu

_MIB = 1024 * 1024


def _pos_emb_kernel(x_ref, pe_ref, o_ref, *, batch):
    """x_ref / o_ref: (s_blk, batch * d_model); pe_ref: (s_blk, d_model).

    pe is widened to the full lane extent inside the kernel (XLU/VPU filler
    hidden under the streaming DMA), so the add and the store are a single
    full-width, lane-dense, unmasked op even when d_model % 128 != 0.
    """
    pe = pe_ref[...]
    if batch > 1:
        pe = jnp.concatenate([pe] * batch, axis=-1)
    o_ref[...] = (x_ref[...] + pe).astype(o_ref.dtype)


def make_pe_table(d_model, max_len=512, dtype=jnp.float32):
    """Sinusoidal table identical to the PyTorch __init__, as a dense (max_len, d_model) array."""
    position = jnp.arange(max_len, dtype=jnp.float32)[:, None]              # (L, 1)
    div_term = jnp.exp(
        jnp.arange(0, d_model, 2, dtype=jnp.float32)
        * (-math.log(10000.0) / d_model)
    )                                                                        # (ceil(D/2),)
    args = position * div_term                                               # (L, ceil(D/2))
    pe = jnp.zeros((max_len, d_model), dtype=jnp.float32)
    pe = pe.at[:, 0::2].set(jnp.sin(args))
    pe = pe.at[:, 1::2].set(jnp.cos(args[:, : d_model // 2]))                # safe for odd d_model
    return pe.astype(dtype)


def _vmem_capacity_bytes():
    """Trace-time VMEM capacity query; conservative fallback if unavailable."""
    try:
        info = pltpu.get_tpu_info()
        return int(getattr(info, "vmem_capacity_bytes", 128 * _MIB))
    except Exception:
        return 128 * _MIB


def _choose_seq_block(S, B, D, itemsize, *, vmem_budget_bytes, sublane,
                      max_rows=2048, min_blocks=1):
    """Rows of the (S, B*D) view per grid step.

    Per-step footprint ~ double-buffered x + out + pe tiles
    = (4*B + 2)*D*itemsize bytes per row, kept under `vmem_budget_bytes`.
    `min_blocks` guarantees a multi-block grid (TC sharding / pipelining) for
    long sequences; rounding is to the dtype's sublane packing.
    """
    if S <= sublane:
        return S                                   # whole (tiny) sequence in one block
    per_row = (4 * B + 2) * D * itemsize
    rows = min(max_rows, S, max(sublane, vmem_budget_bytes // per_row))
    if min_blocks > 1:
        rows = min(rows, -(-S // min_blocks))      # cdiv: at least `min_blocks` blocks
    rows = max(sublane, (rows // sublane) * sublane)
    return rows


def positional_embedding(x, pe, *, seq_block=None):
    """out = x + pe[:S] broadcast over batch; eval-mode dropout == identity.

    x : (S, B, D);  pe : (max_len, D).  A PyTorch-style (max_len, 1, D) buffer
    is accepted and squeezed.  Output dtype follows x (bf16 x stays bf16; the
    PyTorch module with an f32 pe buffer would promote — intentional for
    bandwidth).
    """
    S, B, D = x.shape
    if pe.ndim == 3:                               # (max_len, 1, D) buffer layout -> (max_len, D)
        pe = pe.reshape(pe.shape[0], pe.shape[-1])
    if pe.shape[-1] != D or pe.shape[0] < S:
        raise ValueError(f"pe table {pe.shape} incompatible with x {x.shape}")
    pe = pe.astype(x.dtype)                        # single-dtype kernel (bf16 stays bf16)

    itemsize = jnp.dtype(x.dtype).itemsize
    sublane = max(8, 32 // itemsize)               # 8 (f32) / 16 (bf16) / 32 (int8, fp8)

    # Generation-aware per-step footprint budget: v7x has 64 MiB VMEM per TC
    # (cap at ~24 MiB double-buffered footprint); v5e/v6e have 128 MiB physical
    # and can go larger once vmem_limit_bytes is raised below.
    vmem_cap = _vmem_capacity_bytes()
    budget = 24 * _MIB if vmem_cap <= 64 * _MIB else 32 * _MIB

    # Guarantee >=2 (>=4 for very long) seq blocks so v7x's two TensorCores
    # both stream and the pipeline overlaps DMA with compute.
    if S >= 1024:
        min_blocks = 4
    elif S >= 256:
        min_blocks = 2
    else:
        min_blocks = 1

    if seq_block is not None:
        s_blk = min(seq_block, S)
        if s_blk != S and s_blk % 8 != 0:
            raise ValueError("seq_block must be a multiple of 8 or equal to the sequence length")
    else:
        s_blk = _choose_seq_block(S, B, D, itemsize, vmem_budget_bytes=budget,
                                  sublane=sublane, min_blocks=min_blocks)

    if s_blk == S and S % 8 != 0:
        # Block spans the whole (short, unaligned) sequence: make the pe block
        # equal the full pe leading dim so the (8, 128) tiling rule is satisfied.
        pe = pe[:S]

    x2d = x.reshape(S, B * D)                      # free: contiguous collapse of (B, D)
    grid = (pl.cdiv(S, s_blk),)

    # Scoped-VMEM limit sized to the actual double-buffered per-step footprint
    # (+ headroom), capped well under physical capacity on every generation.
    per_step = (4 * B + 2) * D * itemsize * s_blk
    vmem_limit = int(min(vmem_cap * 3 // 4, max(per_step + 4 * _MIB, 16 * _MIB)))

    kernel = functools.partial(_pos_emb_kernel, batch=B)
    out2d = pl.pallas_call(
        kernel,
        out_shape=jax.ShapeDtypeStruct((S, B * D), x.dtype),
        grid_spec=pltpu.PrefetchScalarGridSpec(
            num_scalar_prefetch=0,
            grid=grid,
            in_specs=[
                pl.BlockSpec((s_blk, B * D), lambda i: (i, 0)),   # x rows, lane/sublane-dense
                pl.BlockSpec((s_blk, D), lambda i: (i, 0)),       # pe rows (pe[:S] folded here)
            ],
            out_specs=pl.BlockSpec((s_blk, B * D), lambda i: (i, 0)),
        ),
        compiler_params=pltpu.CompilerParams(
            # Seq blocks are independent.
            # TODO(synk): swap to pltpu.CORE_PARALLEL for explicit v7x
            # cross-TensorCore sharding once validated on all generations.
            dimension_semantics=("parallel",),
            vmem_limit_bytes=vmem_limit,
        ),
    )(x2d, pe)
    return out2d.reshape(S, B, D)


if __name__ == "__main__":
    # Small shapes consistent with the module (seq-first layout).
    d_model = 32
    max_len = 512
    seq, batch = 8, 2

    key = jax.random.PRNGKey(0)
    x = jax.random.normal(key, (seq, batch, d_model), dtype=jnp.float32)
    pe = make_pe_table(d_model, max_len)                      # (512, 32) float32

    out = jax.block_until_ready(positional_embedding(x, pe))
    ref = x + pe[:seq][:, None, :]
    assert out.shape == (seq, batch, d_model)
    assert jnp.allclose(out, ref, atol=1e-6), "f32 mismatch vs reference"

    # bf16 end-to-end, multi-block grid, 128-aligned d_model (fast lane-dense path).
    s2, b2, d2 = 48, 2, 256
    x2 = jax.random.normal(jax.random.PRNGKey(1), (s2, b2, d2), dtype=jnp.bfloat16)
    pe2 = make_pe_table(d2, max_len)
    out2 = jax.block_until_ready(positional_embedding(x2, pe2, seq_block=16))
    ref2 = x2 + pe2[:s2].astype(jnp.bfloat16)[:, None, :]
    assert jnp.allclose(out2.astype(jnp.float32), ref2.astype(jnp.float32), atol=1e-2), \
        "bf16 mismatch vs reference"

    # Non-128-aligned d_model with several seq blocks: exercises the in-kernel
    # pe widening + single unmasked full-width store path.
    s3, b3, d3 = 64, 2, 96
    x3 = jax.random.normal(jax.random.PRNGKey(2), (s3, b3, d3), dtype=jnp.float32)
    pe3 = make_pe_table(d3, max_len)
    out3 = jax.block_until_ready(positional_embedding(x3, pe3, seq_block=16))
    ref3 = x3 + pe3[:s3][:, None, :]
    assert jnp.allclose(out3, ref3, atol=1e-6), "f32 (unaligned D) mismatch vs reference"

    print("KERNEL_OK")
</pallas_src>

<mosaic_0001>
module attributes {stable_mosaic.version = 11 : i64} {
  func.func @_pos_emb_kernel(%arg0: i32, %arg1: memref<8x64xf32, #tpu.memory_space<vmem>>, %arg2: memref<8x32xf32, #tpu.memory_space<vmem>>, %arg3: memref<8x64xf32, #tpu.memory_space<vmem>>) attributes {dimension_semantics = [#tpu.dimension_semantics<parallel>], iteration_bounds = array<i64: 1>, scalar_prefetch = 0 : i64, scratch_operands = 0 : i64, tpu.core_type = #tpu.core_type<tc>, window_params = [{transform_indices = @transform_0, window_bounds = array<i64: 8, 64>}, {transform_indices = @transform_1, window_bounds = array<i64: 8, 32>}, {transform_indices = @transform_2, window_bounds = array<i64: 8, 64>}]} {
    %c0 = arith.constant 0 : index
    %c0_0 = arith.constant 0 : index
    %0 = vector.load %arg2[%c0, %c0_0] : memref<8x32xf32, #tpu.memory_space<vmem>>, vector<8x32xf32>
    %1 = tpu.concatenate %0, %0 in 1 : vector<8x32xf32>, vector<8x32xf32> -> vector<8x64xf32>
    %c0_1 = arith.constant 0 : index
    %c0_2 = arith.constant 0 : index
    %2 = vector.load %arg1[%c0_1, %c0_2] : memref<8x64xf32, #tpu.memory_space<vmem>>, vector<8x64xf32>
    %3 = arith.addf %2, %1 : vector<8x64xf32>
    %c0_3 = arith.constant 0 : index
    %c0_4 = arith.constant 0 : index
    %4 = vector.load %arg3[%c0_3, %c0_4] : memref<8x64xf32, #tpu.memory_space<vmem>>, vector<8x64xf32>
    tpu.vector_store %arg3[%c0_3, %c0_4], %3 {strides = array<i32>} : memref<8x64xf32, #tpu.memory_space<vmem>>, vector<8x64xf32>,
    return
  }
  func.func @transform_0(%arg0: i32) -> (i32, i32) {
    %c0_i32 = arith.constant 0 : i32
    %c0_i32_0 = arith.constant 0 : i32
    return %arg0, %c0_i32 : i32, i32
  }
  func.func @transform_1(%arg0: i32) -> (i32, i32) {
    %c0_i32 = arith.constant 0 : i32
    %c0_i32_0 = arith.constant 0 : i32
    return %arg0, %c0_i32 : i32, i32
  }
  func.func @transform_2(%arg0: i32) -> (i32, i32) {
    %c0_i32 = arith.constant 0 : i32
    %c0_i32_0 = arith.constant 0 : i32
    return %arg0, %c0_i32 : i32, i32
  }
}

</mosaic_0001>

<bundles_post_ra>
// kernel: tpu_custom_call.1
= control target key start
LH: loop header
LB: loop body
LE: loop exit
PB: predicated region body
PF: predicated region fallthrough
CT: control target
= control target key end

     0   :  { %s93_s0 = inlined_call_operand.vmem [shape: f32[8,64], index: 0, kind: input, shape index: {}]   ;;  %s94_s1 = inlined_call_operand.vmem [shape: f32[512,32], index: 1, kind: input, shape index: {}]   ;;  %s95_s2 = inlined_call_operand.hbm [shape: f32[8,64], index: 2, kind: output, shape index: {}]  }
   0x1   :  { %v12_v0 = vld [vmem:[%s94_s1] sm:$0xff] }
   0x2   :  { %7 = vsyncpa [#allocation3], 0  ;;  %s67_s11 = smov 32   ;;  %vm17_vm0 = vcmask 261120   ;;  %v19_v1 = vld [vmem:[%s93_s0] sm:$0xff]  ;;  %s68_s14 = smov [#allocation2]  }
   0x3   :  { %14 = vrot.lane.b32.xlu0 %v12_v0, %s67_s11  ;;  %s28_s15 = sshll.u32 %s68_s14, 4  ;;  %s30_s18 = sshll.u32 %s95_s2, 4  ;;  %vm21_vm1 = vcmask 523264   ;;  %s29_s15 = int_to_ptr.vmem [resolvable:$true] %s28_s15  ;;  %s31_s18 = int_to_ptr.hbm [resolvable:$true] %s30_s18 }
  0x75   :  { %v15_v2 = vpop.permute.xlu0 %14 }
  0x76   :  { %v18_v3 = vsel %vm17_vm0, %v12_v0, %v15_v2 }
  0x77   :  { %v20_v4 = vadd.f32 %v19_v1, %v18_v3 }
  0x79   :  { %22 = vst.msk [vmem:[#allocation2] sm:$0xff] %vm21_vm1, %v20_v4 }
  0x7a   :  { %33 = dma.vmem_to_hbm [thread:$0]  %s29_s15, 128, %s31_s18, [#allocation3]  }
  0x7b   :  { %65 = dma.done.wait [#allocation3], 128  }
  0x7c   :  { %66 = vsyncadd [#allocation3], 4294967168 }
  0x7d   :  { %38 = vsyncpa [#allocation3], 1 }

</bundles_post_ra>
